<compile_context>
chip_gen: v5e
topology: v5e:2x2
jax: 0.10.0
libtpu: 0.0.40
codegen_flags: <defaults>
</compile_context>

<pallas_src>
import functools

import jax
import jax.numpy as jnp
from jax.experimental import pallas as pl
from jax.experimental.pallas import tpu as pltpu


# -----------------------------------------------------------------------------
# Pallas kernels (one grid step == one batch element; batch dim is squeezed)
# -----------------------------------------------------------------------------
def _encoder_kernel(patch_ref, pcam_ref, gamma_ref,
                    conv_w_ref, conv_b_ref,
                    pt_w1a_ref, pt_w1b_ref, pt_b1_ref, pt_w2_ref, pt_b2_ref,
                    z_w_ref, z_b_ref,
                    feat3d_ref, z_ref):
    """Fused encoder: conv1 + FiLM/pool + z head + 2-layer point MLP."""
    # conv 3x3 as im2col matmul + bias + relu
    feat = jnp.dot(patch_ref[...], conv_w_ref[...],
                   preferred_element_type=jnp.float32)
    feat = jnp.maximum(feat + conv_b_ref[...], 0.0)                    # (HW, Cf)

    # FiLM + spatial mean pool:  mean(feat * (1+gamma)) == mean(feat)*(1+gamma)
    pooled = jnp.mean(feat, axis=0, keepdims=True) * (1.0 + gamma_ref[...])

    # latent z head
    z = jnp.dot(pooled, z_w_ref[...], preferred_element_type=jnp.float32)
    z_ref[...] = (z + z_b_ref[...]).astype(z_ref.dtype)

    # point MLP: relu([p_cam, pooled] @ W1 + b1) @ W2 + b2  (concat-free form)
    h = jnp.dot(pcam_ref[...], pt_w1a_ref[...],
                preferred_element_type=jnp.float32)
    h = h + jnp.dot(pooled, pt_w1b_ref[...],
                    preferred_element_type=jnp.float32)                # broadcast
    h = jnp.maximum(h + pt_b1_ref[...], 0.0)
    f3d = jnp.dot(h, pt_w2_ref[...], preferred_element_type=jnp.float32)
    feat3d_ref[...] = (f3d + pt_b2_ref[...]).astype(feat3d_ref.dtype)


def _decoder_mlp_kernel(ptgt_ref, f3d_ref,
                        w1a_ref, w1b_ref, b1_ref, w2_ref, b2_ref, proj_ref,
                        pix_ref):
    """Fused decoder MLP (2 layers, hidden stays in VMEM) + point->pixel proj."""
    h = jnp.dot(ptgt_ref[...], w1a_ref[...], preferred_element_type=jnp.float32)
    h = h + jnp.dot(f3d_ref[...], w1b_ref[...],
                    preferred_element_type=jnp.float32)
    h = jnp.maximum(h + b1_ref[...], 0.0)
    h = jnp.dot(h, w2_ref[...], preferred_element_type=jnp.float32)
    h = jnp.maximum(h + b2_ref[...], 0.0)                              # (N, Cd)
    pix = jnp.dot(proj_ref[...], h, preferred_element_type=jnp.float32)
    pix_ref[...] = pix.astype(pix_ref.dtype)                           # (HW, Cd)


def _head_kernel(patch_ref, w_ref, b_ref, out_ref, *, n_rgb):
    """Fused RGB(tanh)+mask(sigmoid) conv head.

    Stores the result transposed (C, HW) so the HBM write is lane-dense
    (last dim = HW = 256 instead of 4) and already in NCHW channel order.
    """
    acc = jnp.dot(patch_ref[...], w_ref[...],
                  preferred_element_type=jnp.float32) + b_ref[...]     # (HW, 4)
    col = jax.lax.broadcasted_iota(jnp.int32, acc.shape, dimension=1)
    act = jnp.where(col < n_rgb, jnp.tanh(acc), jax.nn.sigmoid(acc))
    out_ref[...] = act.T.astype(out_ref.dtype)                         # (4, HW)


# -----------------------------------------------------------------------------
# Pallas wrappers
# -----------------------------------------------------------------------------
_VMEM_BUDGET = 24 * 1024 * 1024  # leave headroom under v7x's 32 MiB scoped default


def _check_vmem(*shapes):
    # double-buffered BlockSpec pipeline => roughly 2x each block resident.
    total = 2 * sum(4 * int(jnp.prod(jnp.array(s))) for s in shapes)
    assert total < _VMEM_BUDGET, f"per-step blocks ({total} B) exceed VMEM budget"


def encoder_pallas(patches, p_cam, gamma, params):
    B, HW, K = patches.shape
    _, N, _ = p_cam.shape
    c_feat = params["conv1_w"].shape[1]
    c_3d = params["pt_w2"].shape[1]
    z_dim = params["z_w"].shape[1]
    _check_vmem((HW, K), (N, 3), (1, c_feat), (K, c_feat), (N, c_3d))

    in_specs = [
        pl.BlockSpec((None, HW, K), lambda b: (b, 0, 0)),        # patches
        pl.BlockSpec((None, N, 3), lambda b: (b, 0, 0)),         # p_cam
        pl.BlockSpec((None, 1, c_feat), lambda b: (b, 0, 0)),    # gamma
        pl.BlockSpec((K, c_feat), lambda b: (0, 0)),             # conv1_w
        pl.BlockSpec((1, c_feat), lambda b: (0, 0)),             # conv1_b
        pl.BlockSpec((3, c_feat), lambda b: (0, 0)),             # pt_w1a
        pl.BlockSpec((c_feat, c_feat), lambda b: (0, 0)),        # pt_w1b
        pl.BlockSpec((1, c_feat), lambda b: (0, 0)),             # pt_b1
        pl.BlockSpec((c_feat, c_3d), lambda b: (0, 0)),          # pt_w2
        pl.BlockSpec((1, c_3d), lambda b: (0, 0)),               # pt_b2
        pl.BlockSpec((c_feat, z_dim), lambda b: (0, 0)),         # z_w
        pl.BlockSpec((1, z_dim), lambda b: (0, 0)),              # z_b
    ]
    out_specs = (
        pl.BlockSpec((None, N, c_3d), lambda b: (b, 0, 0)),
        pl.BlockSpec((None, 1, z_dim), lambda b: (b, 0, 0)),
    )
    feats_3d, z = pl.pallas_call(
        _encoder_kernel,
        grid=(B,),
        in_specs=in_specs,
        out_specs=out_specs,
        out_shape=(jax.ShapeDtypeStruct((B, N, c_3d), jnp.float32),
                   jax.ShapeDtypeStruct((B, 1, z_dim), jnp.float32)),
        compiler_params=pltpu.CompilerParams(dimension_semantics=("parallel",)),
    )(patches, p_cam, gamma,
      params["conv1_w"], params["conv1_b"].reshape(1, -1),
      params["pt_w1a"], params["pt_w1b"], params["pt_b1"].reshape(1, -1),
      params["pt_w2"], params["pt_b2"].reshape(1, -1),
      params["z_w"], params["z_b"].reshape(1, -1))
    return feats_3d, z.reshape(B, z_dim)


def decoder_mlp_pallas(p_tgt, feats_3d, params):
    B, N, c_3d = feats_3d.shape
    HW, n_pts = params["proj_P"].shape
    c_dec = params["dec_w2"].shape[1]
    assert n_pts == N
    _check_vmem((N, c_3d), (HW, n_pts), (HW, c_dec))

    return pl.pallas_call(
        _decoder_mlp_kernel,
        grid=(B,),
        in_specs=[
            pl.BlockSpec((None, N, 3), lambda b: (b, 0, 0)),
            pl.BlockSpec((None, N, c_3d), lambda b: (b, 0, 0)),
            pl.BlockSpec((3, c_dec), lambda b: (0, 0)),
            pl.BlockSpec((c_3d, c_dec), lambda b: (0, 0)),
            pl.BlockSpec((1, c_dec), lambda b: (0, 0)),
            pl.BlockSpec((c_dec, c_dec), lambda b: (0, 0)),
            pl.BlockSpec((1, c_dec), lambda b: (0, 0)),
            pl.BlockSpec((HW, n_pts), lambda b: (0, 0)),
        ],
        out_specs=pl.BlockSpec((None, HW, c_dec), lambda b: (b, 0, 0)),
        out_shape=jax.ShapeDtypeStruct((B, HW, c_dec), jnp.float32),
        compiler_params=pltpu.CompilerParams(dimension_semantics=("parallel",)),
    )(p_tgt, feats_3d,
      params["dec_w1a"], params["dec_w1b"], params["dec_b1"].reshape(1, -1),
      params["dec_w2"], params["dec_b2"].reshape(1, -1),
      params["proj_P"])


def head_pallas(patches, w_head, b_head, *, n_rgb=3):
    B, HW, K = patches.shape
    C = w_head.shape[1]
    _check_vmem((HW, K), (K, C), (C, HW))
    kern = functools.partial(_head_kernel, n_rgb=n_rgb)
    return pl.pallas_call(
        kern,
        grid=(B,),
        in_specs=[
            pl.BlockSpec((None, HW, K), lambda b: (b, 0, 0)),
            pl.BlockSpec((K, C), lambda b: (0, 0)),
            pl.BlockSpec((1, C), lambda b: (0, 0)),
        ],
        out_specs=pl.BlockSpec((None, C, HW), lambda b: (b, 0, 0)),
        out_shape=jax.ShapeDtypeStruct((B, C, HW), jnp.float32),
        compiler_params=pltpu.CompilerParams(dimension_semantics=("parallel",)),
    )(patches, w_head, b_head.reshape(1, -1))


# -----------------------------------------------------------------------------
# Glue (im2col, tiny XLA ops, parameter init, model)
# -----------------------------------------------------------------------------
def im2col_3x3(x_nhwc):
    """3x3, stride 1, pad 1 patches. [B, H, W, C] -> [B, H*W, 9*C]."""
    # TODO(synk): for large H,W move this gather inside the Pallas kernel
    # (9 shifted VMEM matmuls) to avoid the 9x HBM expansion.
    B, H, W, C = x_nhwc.shape
    xp = jnp.pad(x_nhwc, ((0, 0), (1, 1), (1, 1), (0, 0)))
    patches = [xp[:, i:i + H, j:j + W, :] for i in range(3) for j in range(3)]
    return jnp.concatenate(patches, axis=-1).reshape(B, H * W, 9 * C)


def _transform_points(points_3d, pose):
    """Homogeneous transform (tiny 4x4 matmul — plain XLA, not worth a kernel)."""
    ones = jnp.ones(points_3d.shape[:-1] + (1,), jnp.float32)
    pts_h = jnp.concatenate([points_3d, ones], axis=-1)            # [B, N, 4]
    return jnp.einsum("bnk,bjk->bnj", pts_h, pose)[..., :3]        # [B, N, 3]


def init_params(key, *, c_img=3, c_feat=32, c_pt=32, c_3d=32, c_dec=32,
                z_dim=16, H=16, W=16, n_pts=64):
    ks = jax.random.split(key, 12)

    def w(k, shape):
        return jax.random.normal(k, shape, jnp.float32) / jnp.sqrt(float(shape[0]))

    return {
        # encoder
        "conv1_w": w(ks[0], (9 * c_img, c_feat)),
        "conv1_b": jnp.zeros((c_feat,), jnp.float32),
        "pose_w":  w(ks[1], (16, c_feat)),
        "pose_b":  jnp.zeros((c_feat,), jnp.float32),
        "z_w":     w(ks[2], (c_feat, z_dim)),
        "z_b":     jnp.zeros((z_dim,), jnp.float32),
        # point-MLP W1 stored pre-split (xyz rows / feature rows) -> concat-free
        "pt_w1a":  w(ks[3], (3, c_pt)),
        "pt_w1b":  w(ks[4], (c_feat, c_pt)),
        "pt_b1":   jnp.zeros((c_pt,), jnp.float32),
        "pt_w2":   w(ks[5], (c_pt, c_3d)),
        "pt_b2":   jnp.zeros((c_3d,), jnp.float32),
        # decoder
        "dec_w1a": w(ks[6], (3, c_dec)),
        "dec_w1b": w(ks[7], (c_3d, c_dec)),
        "dec_b1":  jnp.zeros((c_dec,), jnp.float32),
        "dec_w2":  w(ks[8], (c_dec, c_dec)),
        "dec_b2":  jnp.zeros((c_dec,), jnp.float32),
        "proj_P":  w(ks[9], (H * W, n_pts)),
        # fused rgb(3, tanh) + mask(1, sigmoid) output head
        "out_w":   w(ks[10], (9 * c_dec, 4)),
        "out_b":   jnp.zeros((4,), jnp.float32),
    }


def encode(params, img_nchw, src_pose, points_3d):
    B = img_nchw.shape[0]
    c_feat = params["conv1_w"].shape[1]

    x_nhwc = jnp.transpose(img_nchw, (0, 2, 3, 1))
    patches = im2col_3x3(x_nhwc)                                   # [B, HW, 9*Cimg]

    # tiny matmuls stay in plain XLA (pallas launch overhead >> FLOPs here)
    gamma = (src_pose.reshape(B, 16) @ params["pose_w"]
             + params["pose_b"]).reshape(B, 1, c_feat)
    p_cam = _transform_points(points_3d, src_pose)                 # [B, N, 3]

    feats_3d, z = encoder_pallas(patches, p_cam, gamma, params)
    return feats_3d, z


def decode(params, feats_3d, tgt_pose, points_3d):
    B = feats_3d.shape[0]
    HW = params["proj_P"].shape[0]
    c_dec = params["dec_w2"].shape[1]
    H = W = int(round(HW ** 0.5))

    p_tgt = _transform_points(points_3d, tgt_pose)                 # [B, N, 3]

    pix = decoder_mlp_pallas(p_tgt, feats_3d, params)              # [B, HW, c_dec]

    patches = im2col_3x3(pix.reshape(B, H, W, c_dec))              # [B, HW, 9*c_dec]
    out = head_pallas(patches, params["out_w"], params["out_b"], n_rgb=3)
    out = out.reshape(B, 4, H, W)                                  # already NCHW
    nvs_imgs = out[:, :3]
    nvs_masks = out[:, 3:4]
    return nvs_imgs, nvs_masks


def generator_forward(params, img, src_T_cam_pose, tgt_T_cam_pose, points_3d,
                      features=None, function="full"):
    if function == "encode":
        feats, z = encode(params, img, src_T_cam_pose, points_3d)
        return {"3D_features": feats, "z": z}
    if function == "decode":
        assert features is not None
        nvs_imgs, nvs_masks = decode(params, features, tgt_T_cam_pose, points_3d)
        return {"novel_views": nvs_imgs, "novel_masks": nvs_masks}
    feats, z = encode(params, img, src_T_cam_pose, points_3d)
    nvs_imgs, nvs_masks = decode(params, feats, tgt_T_cam_pose, points_3d)
    return {"novel_views": nvs_imgs, "novel_masks": nvs_masks,
            "3D_features": feats, "z": z}


# -----------------------------------------------------------------------------
# Driver
# -----------------------------------------------------------------------------
if __name__ == "__main__":
    B, Cimg, H, W = 2, 3, 16, 16
    N_PTS = 64

    key = jax.random.PRNGKey(0)
    k_img, k_src, k_tgt, k_pts, k_par = jax.random.split(key, 5)

    img = jax.random.normal(k_img, (B, Cimg, H, W), jnp.float32)        # NCHW
    src_pose = jax.random.normal(k_src, (B, 4, 4), jnp.float32)
    tgt_pose = jax.random.normal(k_tgt, (B, 4, 4), jnp.float32)
    points_3d = jax.random.normal(k_pts, (B, N_PTS, 3), jnp.float32)

    params = init_params(k_par, c_img=Cimg, H=H, W=W, n_pts=N_PTS)

    out = generator_forward(params, img, src_pose, tgt_pose, points_3d,
                            function="full")
    jax.block_until_ready(out)

    assert out["novel_views"].shape == (B, 3, H, W)
    assert out["novel_masks"].shape == (B, 1, H, W)
    assert out["3D_features"].shape == (B, N_PTS, 32)
    assert out["z"].shape == (B, 16)
    print("KERNEL_OK")
</pallas_src>

<mosaic_0001>
module attributes {stable_mosaic.version = 11 : i64} {
  func.func @_encoder_kernel(%arg0: i32, %arg1: memref<1x256x27xf32, #tpu.memory_space<vmem>>, %arg2: memref<1x64x3xf32, #tpu.memory_space<vmem>>, %arg3: memref<1x1x32xf32, #tpu.memory_space<vmem>>, %arg4: memref<27x32xf32, #tpu.memory_space<vmem>>, %arg5: memref<1x32xf32, #tpu.memory_space<vmem>>, %arg6: memref<3x32xf32, #tpu.memory_space<vmem>>, %arg7: memref<32x32xf32, #tpu.memory_space<vmem>>, %arg8: memref<1x32xf32, #tpu.memory_space<vmem>>, %arg9: memref<32x32xf32, #tpu.memory_space<vmem>>, %arg10: memref<1x32xf32, #tpu.memory_space<vmem>>, %arg11: memref<32x16xf32, #tpu.memory_space<vmem>>, %arg12: memref<1x16xf32, #tpu.memory_space<vmem>>, %arg13: memref<1x64x32xf32, #tpu.memory_space<vmem>>, %arg14: memref<1x1x16xf32, #tpu.memory_space<vmem>>) attributes {dimension_semantics = [#tpu.dimension_semantics<parallel>], iteration_bounds = array<i64: 2>, scalar_prefetch = 0 : i64, scratch_operands = 0 : i64, tpu.core_type = #tpu.core_type<tc>, window_params = [{transform_indices = @transform_0, window_bounds = array<i64: 1, 256, 27>}, {transform_indices = @transform_1, window_bounds = array<i64: 1, 64, 3>}, {transform_indices = @transform_2, window_bounds = array<i64: 1, 1, 32>}, {pipeline_mode = #tpu.pipeline_mode<synchronous>, transform_indices = @transform_3, window_bounds = array<i64: 27, 32>}, {pipeline_mode = #tpu.pipeline_mode<synchronous>, transform_indices = @transform_4, window_bounds = array<i64: 1, 32>}, {pipeline_mode = #tpu.pipeline_mode<synchronous>, transform_indices = @transform_5, window_bounds = array<i64: 3, 32>}, {pipeline_mode = #tpu.pipeline_mode<synchronous>, transform_indices = @transform_6, window_bounds = array<i64: 32, 32>}, {pipeline_mode = #tpu.pipeline_mode<synchronous>, transform_indices = @transform_7, window_bounds = array<i64: 1, 32>}, {pipeline_mode = #tpu.pipeline_mode<synchronous>, transform_indices = @transform_8, window_bounds = array<i64: 32, 32>}, {pipeline_mode = #tpu.pipeline_mode<synchronous>, transform_indices = @transform_9, window_bounds = array<i64: 1, 32>}, {pipeline_mode = #tpu.pipeline_mode<synchronous>, transform_indices = @transform_10, window_bounds = array<i64: 32, 16>}, {pipeline_mode = #tpu.pipeline_mode<synchronous>, transform_indices = @transform_11, window_bounds = array<i64: 1, 16>}, {transform_indices = @transform_12, window_bounds = array<i64: 1, 64, 32>}, {transform_indices = @transform_13, window_bounds = array<i64: 1, 1, 16>}]} {
    %c0 = arith.constant 0 : index
    %c0_0 = arith.constant 0 : index
    %c0_1 = arith.constant 0 : index
    %0 = vector.load %arg1[%c0, %c0_0, %c0_1] : memref<1x256x27xf32, #tpu.memory_space<vmem>>, vector<1x256x27xf32>
    %1 = vector.shape_cast %0 : vector<1x256x27xf32> to vector<256x27xf32>
    %c0_2 = arith.constant 0 : index
    %c0_3 = arith.constant 0 : index
    %2 = vector.load %arg4[%c0_2, %c0_3] : memref<27x32xf32, #tpu.memory_space<vmem>>, vector<27x32xf32>
    %cst = arith.constant dense<0.000000e+00> : vector<256x32xf32>
    %3 = tpu.matmul %1, %2, %cst {dimension_numbers = #tpu.dot_dimension_numbers<[1], [0], [0], [1], [0, 0, 1, 1], [], []>} : vector<256x27xf32>, vector<27x32xf32>, vector<256x32xf32> -> vector<256x32xf32>
    %c0_4 = arith.constant 0 : index
    %c0_5 = arith.constant 0 : index
    %4 = vector.load %arg5[%c0_4, %c0_5] : memref<1x32xf32, #tpu.memory_space<vmem>>, vector<1x32xf32>
    %5 = vector.broadcast %4 : vector<1x32xf32> to vector<256x32xf32>
    %6 = arith.addf %3, %5 : vector<256x32xf32>
    %cst_6 = arith.constant 0.000000e+00 : f32
    %7 = vector.broadcast %cst_6 : f32 to vector<256x32xf32>
    %8 = arith.maximumf %6, %7 : vector<256x32xf32>
    %cst_7 = arith.constant dense<0.000000e+00> : vector<32xf32>
    %9 = vector.multi_reduction <add>, %8, %cst_7 [0] : vector<256x32xf32> to vector<32xf32>
    %10 = vector.shape_cast %9 : vector<32xf32> to vector<1x32xf32>
    %cst_8 = arith.constant 2.560000e+02 : f32
    %11 = vector.broadcast %cst_8 : f32 to vector<1x32xf32>
    %12 = arith.divf %10, %11 : vector<1x32xf32>
    %c0_9 = arith.constant 0 : index
    %c0_10 = arith.constant 0 : index
    %c0_11 = arith.constant 0 : index
    %13 = vector.load %arg3[%c0_9, %c0_10, %c0_11] : memref<1x1x32xf32, #tpu.memory_space<vmem>>, vector<1x1x32xf32>
    %14 = vector.shape_cast %13 : vector<1x1x32xf32> to vector<1x32xf32>
    %cst_12 = arith.constant 1.000000e+00 : f32
    %15 = vector.broadcast %cst_12 : f32 to vector<1x32xf32>
    %16 = arith.addf %15, %14 : vector<1x32xf32>
    %17 = arith.mulf %12, %16 : vector<1x32xf32>
    %c0_13 = arith.constant 0 : index
    %c0_14 = arith.constant 0 : index
    %18 = vector.load %arg11[%c0_13, %c0_14] : memref<32x16xf32, #tpu.memory_space<vmem>>, vector<32x16xf32>
    %cst_15 = arith.constant dense<0.000000e+00> : vector<1x16xf32>
    %19 = tpu.matmul %17, %18, %cst_15 {dimension_numbers = #tpu.dot_dimension_numbers<[1], [0], [0], [1], [0, 0, 1, 1], [], []>} : vector<1x32xf32>, vector<32x16xf32>, vector<1x16xf32> -> vector<1x16xf32>
    %c0_16 = arith.constant 0 : index
    %c0_17 = arith.constant 0 : index
    %20 = vector.load %arg12[%c0_16, %c0_17] : memref<1x16xf32, #tpu.memory_space<vmem>>, vector<1x16xf32>
    %21 = arith.addf %19, %20 : vector<1x16xf32>
    %c0_18 = arith.constant 0 : index
    %c0_19 = arith.constant 0 : index
    %c0_20 = arith.constant 0 : index
    %22 = vector.load %arg14[%c0_18, %c0_19, %c0_20] : memref<1x1x16xf32, #tpu.memory_space<vmem>>, vector<1x1x16xf32>
    %23 = vector.shape_cast %22 : vector<1x1x16xf32> to vector<1x16xf32>
    %24 = vector.shape_cast %21 : vector<1x16xf32> to vector<1x1x16xf32>
    tpu.vector_store %arg14[%c0_18, %c0_19, %c0_20], %24 {strides = array<i32>} : memref<1x1x16xf32, #tpu.memory_space<vmem>>, vector<1x1x16xf32>,
    %c0_21 = arith.constant 0 : index
    %c0_22 = arith.constant 0 : index
    %c0_23 = arith.constant 0 : index
    %25 = vector.load %arg2[%c0_21, %c0_22, %c0_23] : memref<1x64x3xf32, #tpu.memory_space<vmem>>, vector<1x64x3xf32>
    %26 = vector.shape_cast %25 : vector<1x64x3xf32> to vector<64x3xf32>
    %c0_24 = arith.constant 0 : index
    %c0_25 = arith.constant 0 : index
    %27 = vector.load %arg6[%c0_24, %c0_25] : memref<3x32xf32, #tpu.memory_space<vmem>>, vector<3x32xf32>
    %cst_26 = arith.constant dense<0.000000e+00> : vector<64x32xf32>
    %28 = tpu.matmul %26, %27, %cst_26 {dimension_numbers = #tpu.dot_dimension_numbers<[1], [0], [0], [1], [0, 0, 1, 1], [], []>} : vector<64x3xf32>, vector<3x32xf32>, vector<64x32xf32> -> vector<64x32xf32>
    %c0_27 = arith.constant 0 : index
    %c0_28 = arith.constant 0 : index
    %29 = vector.load %arg7[%c0_27, %c0_28] : memref<32x32xf32, #tpu.memory_space<vmem>>, vector<32x32xf32>
    %cst_29 = arith.constant dense<0.000000e+00> : vector<1x32xf32>
    %30 = tpu.matmul %17, %29, %cst_29 {dimension_numbers = #tpu.dot_dimension_numbers<[1], [0], [0], [1], [0, 0, 1, 1], [], []>} : vector<1x32xf32>, vector<32x32xf32>, vector<1x32xf32> -> vector<1x32xf32>
    %31 = vector.broadcast %30 : vector<1x32xf32> to vector<64x32xf32>
    %32 = arith.addf %28, %31 : vector<64x32xf32>
    %c0_30 = arith.constant 0 : index
    %c0_31 = arith.constant 0 : index
    %33 = vector.load %arg8[%c0_30, %c0_31] : memref<1x32xf32, #tpu.memory_space<vmem>>, vector<1x32xf32>
    %34 = vector.broadcast %33 : vector<1x32xf32> to vector<64x32xf32>
    %35 = arith.addf %32, %34 : vector<64x32xf32>
    %cst_32 = arith.constant 0.000000e+00 : f32
    %36 = vector.broadcast %cst_32 : f32 to vector<64x32xf32>
    %37 = arith.maximumf %35, %36 : vector<64x32xf32>
    %c0_33 = arith.constant 0 : index
    %c0_34 = arith.constant 0 : index
    %38 = vector.load %arg9[%c0_33, %c0_34] : memref<32x32xf32, #tpu.memory_space<vmem>>, vector<32x32xf32>
    %cst_35 = arith.constant dense<0.000000e+00> : vector<64x32xf32>
    %39 = tpu.matmul %37, %38, %cst_35 {dimension_numbers = #tpu.dot_dimension_numbers<[1], [0], [0], [1], [0, 0, 1, 1], [], []>} : vector<64x32xf32>, vector<32x32xf32>, vector<64x32xf32> -> vector<64x32xf32>
    %c0_36 = arith.constant 0 : index
    %c0_37 = arith.constant 0 : index
    %40 = vector.load %arg10[%c0_36, %c0_37] : memref<1x32xf32, #tpu.memory_space<vmem>>, vector<1x32xf32>
    %41 = vector.broadcast %40 : vector<1x32xf32> to vector<64x32xf32>
    %42 = arith.addf %39, %41 : vector<64x32xf32>
    %c0_38 = arith.constant 0 : index
    %c0_39 = arith.constant 0 : index
    %c0_40 = arith.constant 0 : index
    %43 = vector.load %arg13[%c0_38, %c0_39, %c0_40] : memref<1x64x32xf32, #tpu.memory_space<vmem>>, vector<1x64x32xf32>
    %44 = vector.shape_cast %43 : vector<1x64x32xf32> to vector<64x32xf32>
    %45 = vector.shape_cast %42 : vector<64x32xf32> to vector<1x64x32xf32>
    tpu.vector_store %arg13[%c0_38, %c0_39, %c0_40], %45 {strides = array<i32>} : memref<1x64x32xf32, #tpu.memory_space<vmem>>, vector<1x64x32xf32>,
    return
  }
  func.func @transform_0(%arg0: i32) -> (i32, i32, i32) {
    %c0_i32 = arith.constant 0 : i32
    %c0_i32_0 = arith.constant 0 : i32
    %c0_i32_1 = arith.constant 0 : i32
    return %arg0, %c0_i32, %c0_i32_0 : i32, i32, i32
  }
  func.func @transform_1(%arg0: i32) -> (i32, i32, i32) {
    %c0_i32 = arith.constant 0 : i32
    %c0_i32_0 = arith.constant 0 : i32
    %c0_i32_1 = arith.constant 0 : i32
    return %arg0, %c0_i32, %c0_i32_0 : i32, i32, i32
  }
  func.func @transform_2(%arg0: i32) -> (i32, i32, i32) {
    %c0_i32 = arith.constant 0 : i32
    %c0_i32_0 = arith.constant 0 : i32
    %c0_i32_1 = arith.constant 0 : i32
    return %arg0, %c0_i32, %c0_i32_0 : i32, i32, i32
  }
  func.func @transform_3(%arg0: i32) -> (i32, i32) {
    %c0_i32 = arith.constant 0 : i32
    %c0_i32_0 = arith.constant 0 : i32
    %c0_i32_1 = arith.constant 0 : i32
    return %c0_i32, %c0_i32_0 : i32, i32
  }
  func.func @transform_4(%arg0: i32) -> (i32, i32) {
    %c0_i32 = arith.constant 0 : i32
    %c0_i32_0 = arith.constant 0 : i32
    %c0_i32_1 = arith.constant 0 : i32
    return %c0_i32, %c0_i32_0 : i32, i32
  }
  func.func @transform_5(%arg0: i32) -> (i32, i32) {
    %c0_i32 = arith.constant 0 : i32
    %c0_i32_0 = arith.constant 0 : i32
    %c0_i32_1 = arith.constant 0 : i32
    return %c0_i32, %c0_i32_0 : i32, i32
  }
  func.func @transform_6(%arg0: i32) -> (i32, i32) {
    %c0_i32 = arith.constant 0 : i32
    %c0_i32_0 = arith.constant 0 : i32
    %c0_i32_1 = arith.constant 0 : i32
    return %c0_i32, %c0_i32_0 : i32, i32
  }
  func.func @transform_7(%arg0: i32) -> (i32, i32) {
    %c0_i32 = arith.constant 0 : i32
    %c0_i32_0 = arith.constant 0 : i32
    %c0_i32_1 = arith.constant 0 : i32
    return %c0_i32, %c0_i32_0 : i32, i32
  }
  func.func @transform_8(%arg0: i32) -> (i32, i32) {
    %c0_i32 = arith.constant 0 : i32
    %c0_i32_0 = arith.constant 0 : i32
    %c0_i32_1 = arith.constant 0 : i32
    return %c0_i32, %c0_i32_0 : i32, i32
  }
  func.func @transform_9(%arg0: i32) -> (i32, i32) {
    %c0_i32 = arith.constant 0 : i32
    %c0_i32_0 = arith.constant 0 : i32
    %c0_i32_1 = arith.constant 0 : i32
    return %c0_i32, %c0_i32_0 : i32, i32
  }
  func.func @transform_10(%arg0: i32) -> (i32, i32) {
    %c0_i32 = arith.constant 0 : i32
    %c0_i32_0 = arith.constant 0 : i32
    %c0_i32_1 = arith.constant 0 : i32
    return %c0_i32, %c0_i32_0 : i32, i32
  }
  func.func @transform_11(%arg0: i32) -> (i32, i32) {
    %c0_i32 = arith.constant 0 : i32
    %c0_i32_0 = arith.constant 0 : i32
    %c0_i32_1 = arith.constant 0 : i32
    return %c0_i32, %c0_i32_0 : i32, i32
  }
  func.func @transform_12(%arg0: i32) -> (i32, i32, i32) {
    %c0_i32 = arith.constant 0 : i32
    %c0_i32_0 = arith.constant 0 : i32
    %c0_i32_1 = arith.constant 0 : i32
    return %arg0, %c0_i32, %c0_i32_0 : i32, i32, i32
  }
  func.func @transform_13(%arg0: i32) -> (i32, i32, i32) {
    %c0_i32 = arith.constant 0 : i32
    %c0_i32_0 = arith.constant 0 : i32
    %c0_i32_1 = arith.constant 0 : i32
    return %arg0, %c0_i32, %c0_i32_0 : i32, i32, i32
  }
}

</mosaic_0001>

<bundles_post_ra>
// kernel: tpu_custom_call.1
= control target key start
LH: loop header
LB: loop body
LE: loop exit
PB: predicated region body
PF: predicated region fallthrough
CT: control target
= control target key end

     0   :  { %s1850_s0 = inlined_call_operand.vmem [shape: f32[2,256,27], index: 0, kind: input, shape index: {}]   ;;  %s1851_s1 = inlined_call_operand.vmem [shape: f32[2,64,3], index: 1, kind: input, shape index: {}]   ;;  %s1852_s2 = inlined_call_operand.vmem [shape: f32[2,1,32], index: 2, kind: input, shape index: {}]   ;;  %s1853_s3 = inlined_call_operand.vmem [shape: f32[27,32], index: 3, kind: input, shape index: {}]   ;;  %s1854_s4 = inlined_call_operand.vmem [shape: f32[1,32], index: 4, kind: input, shape index: {}]   ;;  %s1855_s5 = inlined_call_operand.vmem [shape: f32[3,32], index: 5, kind: input, shape index: {}]   ;;  %s1856_s6 = inlined_call_operand.vmem [shape: f32[32,32], index: 6, kind: input, shape index: {}]   ;;  %s1857_s7 = inlined_call_operand.vmem [shape: f32[1,32], index: 7, kind: input, shape index: {}]   ;;  %s1858_s8 = inlined_call_operand.vmem [shape: f32[32,32], index: 8, kind: input, shape index: {}]   ;;  %s1859_s9 = inlined_call_operand.vmem [shape: f32[1,32], index: 9, kind: input, shape index: {}]   ;;  %s1860_s10 = inlined_call_operand.vmem [shape: f32[32,16], index: 10, kind: input, shape index: {}]   ;;  %s1861_s11 = inlined_call_operand.vmem [shape: f32[1,16], index: 11, kind: input, shape index: {}]   ;;  %s1862_s12 = inlined_call_operand.vmem [shape: f32[2,64,32], index: 12, kind: output, shape index: {0}]   ;;  %s1863_s13 = inlined_call_operand.hbm [shape: f32[2,1,16], index: 13, kind: output, shape index: {1}]  }
   0x1   :  { %1865 = sst [smem:[#allocation5_spill]] %s1850_s0 }
   0x2   :  { %1866 = sst [smem:[#allocation6_spill]] %s1851_s1 }
   0x3   :  { %1867 = sst [smem:[#allocation7_spill]] %s1852_s2 }
   0x4   :  { %1868 = sst [smem:[#allocation8_spill]] %s1853_s3 }
   0x5   :  { %1869 = sst [smem:[#allocation9_spill]] %s1854_s4 }
   0x6   :  { %1870 = sst [smem:[#allocation10_spill]] %s1855_s5 }
   0x7   :  { %19 = vsyncpa [#allocation3], 0 }
   0x8   :  { %21 = vsyncpa [#allocation3 + $0x1], 0  ;;  %s1467_s25 = smov 0   ;;  %s1469_s26 = smov 0  }
   0x9   :  { %s1471_s27 = smov 0   ;;  %s1473_s28 = smov 0  }
   0xa LB: > { %s1488_s29 = sadd.s32 4294967295, %s1394_s28   ;;  %s1208_s30 = sadd.s32 4294967294, %s1394_s28   ;;  %s1394_s28 = sphi %s1473_s28, %s1883_s28   ;;  %s1390_s27 = sphi %s1471_s27, %s1882_s27   ;;  %s1386_s26 = sphi %s1469_s26, %s1881_s26   ;;  %s1382_s25 = sphi %s1467_s25, %s1880_s25  }
   0xb   : > { %s1492_s14 = sadd.s32 1, %s1394_s28   ;;  %s327_s15 = sadd.s32 1, %s1390_s27 }
   0xc   : > { %s324_s16 = ssub.s32 %s1394_s28, %s1492_s14  ;;  %p337_p0 = scmp.ne.s32.totalorder %s1390_s27, %s1386_s26 }
   0xd   : > { %p325_p1 = scmp.eq.s32.totalorder %s324_s16, 0  ;;  %p338_p2 = scmp.eq.s32.totalorder %s1488_s29, 1 }
   0xe   : > { %p343_p3 = scmp.ne.s32.totalorder %s1386_s26, %s1382_s25  ;;  %p344_p4 = scmp.eq.s32.totalorder %s1208_s30, 1 }
   0xf   : > { %s1503_s17 = scalar_select %p325_p1, %s1390_s27, %s327_s15  }
  0x10   : > { %p1505_p5 = por %p338_p2, %p337_p0  ;;  %p1509_p6 = por %p344_p4, %p343_p3 }
  0x11   : > { %p1211_p7 = scmp.ge.s32.totalorder %s1394_s28, 1  ;;  %p411_p8 = scmp.lt.s32.totalorder %s1394_s28, 3 }
  0x13   : > { %p412_p9 = pnand %p1211_p7, %p411_p8 }
  0x14   : > { %s1873_s3 = sld [smem:[#allocation8_spill]] (!%p412_p9)  ;;  %p467_p10 = scmp.lt.s32.totalorder (!%p412_p9), %s1488_s29, 1 }
  0x15   : > { %415 = sbr.rel (%p412_p9) target bundleno = 642 (0x282), region = 68  ;;  %s1874_s0 = sld [smem:[#allocation5_spill]] (!%p412_p9) }
  0x16   : > { %s1875_s4 = sld [smem:[#allocation9_spill]] (!%p412_p9)  ;;  %s465_s23 = sand.u32 (!%p412_p9), 1, %s1386_s26  }
  0x17   : > { %s1876_s1 = sld [smem:[#allocation6_spill]] (!%p412_p9)  ;;  %s1786_s16 = scalar_lea.vmem (!%p412_p9), [#allocation2], %s465_s23 }
  0x18   : > { %s1877_s5 = sld [smem:[#allocation10_spill]] (!%p412_p9) }
  0x19   : > { %s1878_s2 = sld [smem:[#allocation7_spill]] (!%p412_p9) }
  0x1a   : > { %v520_v0 = vld [vmem:[%s1873_s3 + $0x18] sm:$0x7]  ;;  %vm622_vm0 = vcmask 1042432   ;;  %v519_v1 = vld [vmem:[%s1873_s3 + $0x10] sm:$0xff]  ;;  %v518_v2 = vld [vmem:[%s1873_s3 + $0x8] sm:$0xff]  ;;  %s1528_s15 = scalar_select %p467_p10, %s1488_s29, 1 }
  0x1b   : > { %1218 = vmatpush.msk.msra.mxu0 %vm622_vm0, %v520_v0  ;;  %1276 = vmatpush.msk.msra.mxu2 %vm622_vm0, %v520_v0  ;;  %v517_v3 = vld [vmem:[%s1873_s3] sm:$0xff]  ;;  %vm525_vm1 = vcmask 220160   ;;  %vm771_vm2 = vcmask 261120   ;;  %v894_v51 = vld [vmem:[%s1856_s6 + $0x18] sm:$0xff]  ;;  %v893_v57 = vld [vmem:[%s1856_s6 + $0x10] sm:$0xff]  ;;  %vm916_vm3 = vcmask 23552  }
  0x1c   : > { %1275 = vmatpush.msk.msra.mxu1 %vm622_vm0, %v520_v0  ;;  %1277 = vmatpush.msk.msra.mxu3 %vm622_vm0, %v520_v0  ;;  %s1272_s21 = sshll.u32 %s1528_s15, 8  ;;  %v1608_v37 = vld [vmem:[%s1875_s4] ss:$0 sm:$0xff]  ;;  %vm880_vm5 = vcmask 122880  }
  0x1d   : > { %639 = vmatpush.msra.mxu0 %v519_v1  ;;  %1279 = vmatpush.msra.mxu2 %v519_v1  ;;  %s1539_s24 = scalar_lea.vmem %s1874_s0, %s1272_s21  ;;  %s1103_s0 = scalar_lea.hbm %s1863_s13, %s1488_s29 }
  0x1e   : > { %1278 = vmatpush.msra.mxu1 %v519_v1  ;;  %1280 = vmatpush.msra.mxu3 %v519_v1  ;;  %v485_v4 = vld [vmem:[%s1539_s24] sm:$0xff]  ;;  %v500_v5 = vld [vmem:[%s1539_s24 + $0x78] sm:$0xff]  ;;  %v486_v6 = vld [vmem:[%s1539_s24 + $0x8] sm:$0xff]  ;;  %s1107_s30 = sshll.u32 %s1103_s0, 4  ;;  %s1108_s30 = int_to_ptr.hbm [resolvable:$true] %s1107_s30 }
  0x1f   : > { %640 = vmatpush.msra.mxu0 %v518_v2  ;;  %1282 = vmatpush.msra.mxu2 %v518_v2  ;;  %v501_v7 = vld [vmem:[%s1539_s24 + $0x80] sm:$0xff]  ;;  %v487_v8 = vld [vmem:[%s1539_s24 + $0x10] sm:$0xff]  ;;  %v502_v9 = vld [vmem:[%s1539_s24 + $0x88] sm:$0xff]  ;;  %s479_s22 = scalar_lea.vmem %s1878_s2, %s1528_s15  ;;  %s1346_s21 = sshra.s32 %s1108_s30, 4  ;;  %s1347_s21 = int_to_ptr.hbm [resolvable:$true] %s1346_s21 }
  0x20   : > { %1281 = vmatpush.msra.mxu1 %v518_v2  ;;  %1283 = vmatpush.msra.mxu3 %v518_v2  ;;  %v488_v10 = vld [vmem:[%s1539_s24 + $0x18] sm:$0xff]  ;;  %v503_v11 = vld [vmem:[%s1539_s24 + $0x90] sm:$0xff]  ;;  %v489_v12 = vld [vmem:[%s1539_s24 + $0x20] sm:$0xff]  ;;  %s1348_s2 = scalar_lea.hbm %s1347_s21, 1  ;;  %p1353_p0 = scmp.lt.s32.totalorder %s1347_s21, %s1863_s13 }
  0x21   : > { %641 = vmatpush.msra.mxu0 %v517_v3  ;;  %1285 = vmatpush.msra.mxu2 %v517_v3  ;;  %v504_v13 = vld [vmem:[%s1539_s24 + $0x98] sm:$0xff]  ;;  %v490_v14 = vld [vmem:[%s1539_s24 + $0x28] sm:$0xff]  ;;  %v505_v15 = vld [vmem:[%s1539_s24 + $0xa0] sm:$0xff]  ;;  %p1349_p11 = scmp.ne.s32.totalorder %s1347_s21, %s1348_s2 }
  0x22   : > { %1219 = vmatmul.msk.f32.vlgmr.msra.gmra.mxu0 %vm525_vm1, %v485_v4  ;;  %1234 = vmatmul.msk.f32.vlgmr.msra.gmra.mxu2 %vm525_vm1, %v500_v5  ;;  %v491_v16 = vld [vmem:[%s1539_s24 + $0x30] sm:$0xff]  ;;  %v506_v17 = vld [vmem:[%s1539_s24 + $0xa8] sm:$0xff]  ;;  %v492_v18 = vld [vmem:[%s1539_s24 + $0x38] sm:$0xff] }
  0x23   : > { %1284 = vmatpush.msra.mxu1 %v517_v3  ;;  %1286 = vmatpush.msra.mxu3 %v517_v3  ;;  %v507_v19 = vld [vmem:[%s1539_s24 + $0xb0] sm:$0xff]  ;;  %v498_v20 = vld [vmem:[%s1539_s24 + $0x68] sm:$0xff]  ;;  %v493_v21 = vld [vmem:[%s1539_s24 + $0x40] sm:$0xff]  ;;  %p1350_p12 = pnand %p1349_p11, %p1505_p5 }
  0x24   : > { %1232 = vmatmul.msk.f32.vlgmr.msra.gmra.mxu1 %vm525_vm1, %v498_v20  ;;  %v508_v22 = vld [vmem:[%s1539_s24 + $0xb8] sm:$0xff]  ;;  %v499_v24 = vld [vmem:[%s1539_s24 + $0x70] sm:$0xff]  ;;  %v494_v25 = vld [vmem:[%s1539_s24 + $0x48] sm:$0xff]  ;;  %907 = vmatpush.msrb.mxu2 %v894_v51 }
  0x25   : > { %v512_v23 = vld [vmem:[%s1539_s24 + $0xd8] sm:$0xff]  ;;  %v509_v26 = vld [vmem:[%s1539_s24 + $0xc0] sm:$0xff]  ;;  %v495_v28 = vld [vmem:[%s1539_s24 + $0x50] sm:$0xff]  ;;  %p1351_p13 = pneg %p1350_p12 }
  0x26   : > { %1246 = vmatmul.msk.f32.vlgmr.msra.gmra.mxu3 %vm525_vm1, %v512_v23  ;;  %v513_v27 = vld [vmem:[%s1539_s24 + $0xe0] sm:$0xff]  ;;  %v510_v29 = vld [vmem:[%s1539_s24 + $0xc8] sm:$0xff]  ;;  %v496_v31 = vld [vmem:[%s1539_s24 + $0x58] sm:$0xff]  ;;  %908 = vmatpush.msrb.mxu2 %v893_v57 }
  0x27   : > { %v514_v30 = vld [vmem:[%s1539_s24 + $0xe8] sm:$0xff]  ;;  %v511_v32 = vld [vmem:[%s1539_s24 + $0xd0] sm:$0xff]  ;;  %v497_v34 = vld [vmem:[%s1539_s24 + $0x60] sm:$0xff] }
  0x28   : > { %v515_v33 = vld [vmem:[%s1539_s24 + $0xf0] sm:$0xff]  ;;  %v516_v35 = vld [vmem:[%s1539_s24 + $0xf8] sm:$0xff]  ;;  %s1864_s24 = sshll.u32 %s1528_s15, 6  ;;  %v890_v62 = vld [vmem:[%s1877_s5] sm:$0x7] }
  0x29   : > { %s1640_s20 = scalar_lea.vmem %s1876_s1, %s1864_s24  ;;  %1253 = vmatpush.msk.msrb.mxu3 %vm622_vm0, %v890_v62  ;;  %s1092_s24 = scalar_lea.sflag [#allocation3], %s465_s23 }
  0x2a   : > { %1220 = vmatmul.msk.f32.gmra.mxu0 %vm525_vm1, %v486_v6  ;;  %1235 = vmatmul.msk.f32.gmra.mxu2 %vm525_vm1, %v501_v7  ;;  %v882_v0 = vld [vmem:[%s1640_s20] sm:$0xff]  ;;  %s1352_s1 = scalar_lea.hbm %s1863_s13, 2 }
  0x2b   : > { %p1354_p1 = scmp.lt.s32.totalorder %s1352_s1, %s1348_s2 }
  0x2c   : > { %1233 = vmatmul.msk.f32.gmra.mxu1 %vm525_vm1, %v499_v24 }
  0x2d   : > { %p1355_p2 = por %p1354_p1, %p1353_p0 }
  0x2e   : > { %1247 = vmatmul.msk.f32.gmra.mxu3 %vm525_vm1, %v513_v27 }
  0x2f   : > { %p1356_p3 = pnand %p1355_p2, %p1351_p13 }
  0x32   : > { %1221 = vmatmul.msk.f32.gmra.mxu0 %vm525_vm1, %v487_v8  ;;  %1236 = vmatmul.msk.f32.gmra.mxu2 %vm525_vm1, %v502_v9 }
  0x36   : > { %1248 = vmatmul.msk.f32.gmra.mxu3 %vm525_vm1, %v514_v30 }
  0x3a   : > { %1222 = vmatmul.msk.f32.gmra.mxu0 %vm525_vm1, %v488_v10  ;;  %1237 = vmatmul.msk.f32.gmra.mxu2 %vm525_vm1, %v503_v11  ;;  %v883_v11 = vld [vmem:[%s1640_s20 + $0x8] sm:$0xff] }
  0x3e   : > { %1249 = vmatmul.msk.f32.gmra.mxu3 %vm525_vm1, %v515_v33 }
  0x42   : > { %1223 = vmatmul.msk.f32.gmra.mxu0 %vm525_vm1, %v489_v12  ;;  %1238 = vmatmul.msk.f32.gmra.mxu2 %vm525_vm1, %v504_v13 }
  0x46   : > { %1250 = vmatmul.msk.f32.gmra.mxu3 %vm525_vm1, %v516_v35 }
  0x4a   : > { %1224 = vmatmul.msk.f32.gmra.mxu0 %vm525_vm1, %v490_v14  ;;  %1239 = vmatmul.msk.f32.gmra.mxu2 %vm525_vm1, %v505_v15 }
  0x4e   : > { %1254 = vmatmul.msk.f32.vlgmr.msrb.gmra.mxu3 %vm916_vm3, %v882_v0 }
  0x52   : > { %1225 = vmatmul.msk.f32.gmra.mxu0 %vm525_vm1, %v491_v16  ;;  %1240 = vmatmul.msk.f32.gmra.mxu2 %vm525_vm1, %v506_v17 }
  0x56   : > { %1255 = vmatmul.msk.f32.gmra.mxu3 %vm916_vm3, %v883_v11 }
  0x5a   : > { %1226 = vmatmul.msk.f32.gmra.mxu0 %vm525_vm1, %v492_v18  ;;  %1241 = vmatmul.msk.f32.gmra.mxu2 %vm525_vm1, %v507_v19 }
  0x62   : > { %1227 = vmatmul.msk.f32.gmra.mxu0 %vm525_vm1, %v493_v21  ;;  %1242 = vmatmul.msk.f32.gmra.mxu2 %vm525_vm1, %v508_v22 }
  0x6a   : > { %1228 = vmatmul.msk.f32.gmra.mxu0 %vm525_vm1, %v494_v25  ;;  %1243 = vmatmul.msk.f32.gmra.mxu2 %vm525_vm1, %v509_v26 }
  0x72   : > { %1229 = vmatmul.msk.f32.gmra.mxu0 %vm525_vm1, %v495_v28  ;;  %1244 = vmatmul.msk.f32.gmra.mxu2 %vm525_vm1, %v510_v29 }
  0x7a   : > { %1230 = vmatmul.msk.f32.gmra.mxu0 %vm525_vm1, %v496_v31  ;;  %1245 = vmatmul.msk.f32.gmra.mxu2 %vm525_vm1, %v511_v32  ;;  %v884_v31 = vld [vmem:[%s1640_s20 + $0x10] sm:$0xff] }
  0x7b   : > { %1256 = vmatmul.msk.f32.gmra.mxu3 %vm916_vm3, %v884_v31 }
  0x82   : > { %1231 = vmatmul.msk.f32.gmra.mxu0 %vm525_vm1, %v497_v34 }
  0x9f   : > { %v643_v36 = vpop.f32.mrf.mxu0 }
  0xa0   : > { %v644_v38 = vadd.f32 %v1608_v37, %v643_v36 }
  0xa1   : > { %v682_v17 = vpop.f32.mrf.mxu1 }
  0xa2   : > { %v739_v41 = vmax.f32 %v644_v38, 0.0  ;;  %v683_v51 = vadd.f32 %v1608_v37, %v682_v17 }
  0xa4   : > { %v772_v44 = vsel %vm771_vm2, %v739_v41, 0.0 }
  0xa5   : > { %v1611_v39 = vpop.f32.mrf.mxu2 }
  0xa7   : > { %v646_v40 = vpop.f32.mrf.mxu0 }
  0xa8   : > { %v647_v42 = vadd.f32 %v1608_v37, %v646_v40 }
  0xa9   : > { %v1666_v27 = vpop.f32.mrf.mxu3 }
  0xaa   : > { %v740_v43 = vmax.f32 %v647_v42, 0.0 }
  0xac   : > { %v773_v45 = vsel %vm771_vm2, %v740_v43, 0.0  ;;  %v685_v43 = vpop.f32.mrf.mxu1 }
  0xad   : > { %v774_v46 = vadd.f32 %v773_v45, %v772_v44  ;;  %v1616_v47 = vpop.f32.mrf.mxu2 }
  0xaf   : > { %v649_v48 = vpop.f32.mrf.mxu0 }
  0xb0   : > { %v650_v63 = vadd.f32 %v1608_v37, %v649_v48  ;;  %v892_v48 = vld [vmem:[%s1856_s6 + $0x8] sm:$0xff] }
  0xb1   : > { %909 = vmatpush.msrb.mxu2 %v892_v48 }
  0xb2   : > { %v741_v3 = vmax.f32 %v650_v63, 0.0 }
  0xb4   : > { %v775_v8 = vsel %vm771_vm2, %v741_v3, 0.0 }
  0xb5   : > { %v1618_v50 = vpop.f32.mrf.mxu2  ;;  %v776_v16 = vadd.f32 %v775_v8, %v774_v46 }
  0xb6   : > { %v695_v11 = vadd.f32 %v1608_v37, %v1618_v50 }
  0xb7   : > { %v652_v49 = vpop.f32.mrf.mxu0 }
  0xb8   : > { %v653_v2 = vadd.f32 %v1608_v37, %v652_v49  ;;  %v756_v50 = vmax.f32 %v695_v11, 0.0 }
  0xba   : > { %v742_v6 = vmax.f32 %v653_v2, 0.0  ;;  %v752_v2 = vmax.f32 %v683_v51, 0.0 }
  0xbc   : > { %v777_v13 = vsel %vm771_vm2, %v742_v6, 0.0 }
  0xbd   : > { %v1623_v53 = vpop.f32.mrf.mxu2  ;;  %v778_v21 = vadd.f32 %v777_v13, %v776_v16 }
  0xbf   : > { %v655_v52 = vpop.f32.mrf.mxu0 }
  0xc0   : > { %v656_v4 = vadd.f32 %v1608_v37, %v655_v52  ;;  %v686_v52 = vadd.f32 %v1608_v37, %v685_v43 }
  0xc2   : > { %v743_v9 = vmax.f32 %v656_v4, 0.0  ;;  %v753_v4 = vmax.f32 %v686_v52, 0.0  ;;  %v891_v52 = vld [vmem:[%s1856_s6] sm:$0xff] }
  0xc3   : > { %910 = vmatpush.msrb.mxu2 %v891_v52 }
  0xc4   : > { %v779_v18 = vsel %vm771_vm2, %v743_v9, 0.0  ;;  %v799_v13 = vsel %vm771_vm2, %v753_v4, 0.0 }
  0xc5   : > { %v1625_v55 = vpop.f32.mrf.mxu2  ;;  %v780_v26 = vadd.f32 %v779_v18, %v778_v21 }
  0xc7   : > { %v658_v54 = vpop.f32.mrf.mxu0 }
  0xc8   : > { %v659_v7 = vadd.f32 %v1608_v37, %v658_v54 }
  0xca   : > { %v744_v14 = vmax.f32 %v659_v7, 0.0  ;;  %v692_v7 = vadd.f32 %v1608_v37, %v1616_v47  ;;  %v698_v47 = vadd.f32 %v1608_v37, %v1623_v53  ;;  %v805_v53 = vsel %vm771_vm2, %v756_v50, 0.0 }
  0xcc   : > { %v781_v22 = vsel %vm771_vm2, %v744_v14, 0.0  ;;  %v886_v14 = vld [vmem:[%s1640_s20 + $0x20] sm:$0xff] }
  0xcd   : > { %v1630_v58 = vpop.f32.mrf.mxu2  ;;  %v782_v32 = vadd.f32 %v781_v22, %v780_v26 }
  0xcf   : > { %v661_v56 = vpop.f32.mrf.mxu0 }
  0xd0   : > { %v662_v10 = vadd.f32 %v1608_v37, %v661_v56  ;;  %v885_v56 = vld [vmem:[%s1640_s20 + $0x18] sm:$0xff] }
  0xd1   : > { %1257 = vmatmul.msk.f32.gmra.mxu3 %vm916_vm3, %v885_v56  ;;  %v853_v56 = vld [vmem:[%s1860_s10 + $0x8] sm:$0xff] }
  0xd2   : > { %v745_v19 = vmax.f32 %v662_v10, 0.0 }
  0xd4   : > { %v783_v28 = vsel %vm771_vm2, %v745_v19, 0.0 }
  0xd5   : > { %v1632_v61 = vpop.f32.mrf.mxu2  ;;  %v784_v38 = vadd.f32 %v783_v28, %v782_v32 }
  0xd7   : > { %v664_v59 = vpop.f32.mrf.mxu0 }
  0xd8   : > { %v665_v15 = vadd.f32 %v1608_v37, %v664_v59 }
  0xd9   : > { %1258 = vmatmul.msk.f32.gmra.mxu3 %vm916_vm3, %v886_v14 }
  0xda   : > { %v746_v23 = vmax.f32 %v665_v15, 0.0  ;;  %v755_v15 = vmax.f32 %v692_v7, 0.0 }
  0xdc   : > { %v785_v34 = vsel %vm771_vm2, %v746_v23, 0.0  ;;  %v803_v22 = vsel %vm771_vm2, %v755_v15, 0.0  ;;  %v757_v23 = vmax.f32 %v698_v47, 0.0 }
  0xdd   : > { %v1651_v5 = vpop.f32.mrf.mxu2  ;;  %v786_v42 = vadd.f32 %v785_v34, %v784_v38 }
  0xdf   : > { %v667_v60 = vpop.f32.mrf.mxu0 }
  0xe0   : > { %v668_v20 = vadd.f32 %v1608_v37, %v667_v60  ;;  %v1683_v60 = vpop.f32.mrf.mxu3 }
  0xe1   : > { %v728_v7 = vadd.f32 %v1608_v37, %v1683_v60 }
  0xe2   : > { %v747_v29 = vmax.f32 %v668_v20, 0.0  ;;  %v701_v20 = vadd.f32 %v1608_v37, %v1625_v55  ;;  %v807_v55 = vsel %vm771_vm2, %v757_v23, 0.0 }
  0xe3   : > { %v767_v15 = vmax.f32 %v728_v7, 0.0 }
  0xe4   : > { %v787_v40 = vsel %vm771_vm2, %v747_v29, 0.0  ;;  %v758_v28 = vmax.f32 %v701_v20, 0.0  ;;  %v707_v29 = vadd.f32 %v1608_v37, %v1632_v61 }
  0xe5   : > { %v1664_v25 = vpop.f32.mrf.mxu2  ;;  %v788_v46 = vadd.f32 %v787_v40, %v786_v42 }
  0xe7   : > { %v670_v1 = vpop.f32.mrf.mxu0 }
  0xe8   : > { %v671_v24 = vadd.f32 %v1608_v37, %v670_v1  ;;  %v689_v1 = vadd.f32 %v1608_v37, %v1611_v39  ;;  %v1701_v18 = vpop.f32.mrf.mxu3 }
  0xea   : > { %v748_v35 = vmax.f32 %v671_v24, 0.0  ;;  %v754_v10 = vmax.f32 %v689_v1, 0.0  ;;  %v704_v24 = vadd.f32 %v1608_v37, %v1630_v58  ;;  %v809_v58 = vsel %vm771_vm2, %v758_v28, 0.0 }
  0xec   : > { %v789_v44 = vsel %vm771_vm2, %v748_v35, 0.0  ;;  %v801_v19 = vsel %vm771_vm2, %v754_v10, 0.0  ;;  %v759_v32 = vmax.f32 %v704_v24, 0.0  ;;  %v760_v35 = vmax.f32 %v707_v29, 0.0 }
  0xed   : > { %v715_v54 = vpop.f32.mrf.mxu2  ;;  %v790_v57 = vadd.f32 %v789_v44, %v788_v46  ;;  %v1396_v10 = vmov 256.0  }
  0xee   : > { %v716_v43 = vadd.f32 %v1608_v37, %v715_v54  ;;  %v854_v54 = vld [vmem:[%s1860_s10 + $0x10] sm:$0xff]  ;;  %1330 = vrcp.f32 %v1396_v10 }
  0xef   : > { %v673_v12 = vpop.f32.mrf.mxu0 }
  0xf0   : > { %v674_v30 = vadd.f32 %v1608_v37, %v673_v12  ;;  %v797_v12 = vsel %vm771_vm2, %v752_v2, 0.0  ;;  %v733_v40 = vpop.f32.mrf.mxu3 }
  0xf1   : > { %v734_v60 = vadd.f32 %v1608_v37, %v733_v40 }
  0xf2   : > { %v749_v41 = vmax.f32 %v674_v30, 0.0  ;;  %v887_v30 = vld [vmem:[%s1640_s20 + $0x28] sm:$0xff] }
  0xf3   : > { %1259 = vmatmul.msk.f32.gmra.mxu3 %vm916_vm3, %v887_v30 }
  0xf4   : > { %v791_v49 = vsel %vm771_vm2, %v749_v41, 0.0  ;;  %v811_v41 = vsel %vm771_vm2, %v759_v32, 0.0  ;;  %v1331_v50 = vpop.eup %1330 }
  0xf5   : > { %v792_v0 = vadd.f32 %v791_v49, %v790_v57  ;;  %v718_v17 = vpop.f32.mrf.mxu2  ;;  %v888_v49 = vld [vmem:[%s1640_s20 + $0x30] sm:$0xff]  ;;  %vm846_vm4 = vweird.f32 %v1331_v50 }
  0xf6   : > { %v719_v48 = vadd.f32 %v1608_v37, %v718_v17 }
  0xf7   : > { %v676_v33 = vpop.f32.mrf.mxu0 }
  0xf8   : > { %v677_v36 = vadd.f32 %v1608_v37, %v676_v33  ;;  %v710_v33 = vadd.f32 %v1608_v37, %v1651_v5  ;;  %v855_v5 = vld [vmem:[%s1860_s10 + $0x18] sm:$0xff]  ;;  %v764_v2 = vmax.f32 %v719_v48, 0.0 }
  0xf9   : > { %872 = vmatpush.msrb.mxu1 %v855_v5  ;;  %v1007_v5 = vld [vmem:[%s1858_s8 + $0x10] sm:$0xff] }
  0xfa   : > { %v750_v45 = vmax.f32 %v677_v36, 0.0  ;;  %v713_v36 = vadd.f32 %v1608_v37, %v1664_v25  ;;  %v761_v42 = vmax.f32 %v710_v33, 0.0 }
  0xfb   : > { %1260 = vmatmul.msk.f32.gmra.mxu3 %vm916_vm3, %v888_v49  ;;  %873 = vmatpush.msrb.mxu1 %v854_v54  ;;  %v856_v49 = vld [vmem:[%s1861_s11] sm:$0x1] }
  0xfc   : > { %v793_v62 = vsel %vm771_vm2, %v750_v45, 0.0  ;;  %v813_v45 = vsel %vm771_vm2, %v760_v35, 0.0  ;;  %v762_v46 = vmax.f32 %v713_v36, 0.0  ;;  %v815_v57 = vsel %vm771_vm2, %v761_v42, 0.0  ;;  %v849_v36 = vld [vmem:[%s479_s22] sm:$0x1] }
  0xfd   : > { %v794_v6 = vadd.f32 %v793_v62, %v792_v0  ;;  %v721_v61 = vpop.f32.mrf.mxu2  ;;  %v852_v0 = vld [vmem:[%s1860_s10] sm:$0xff]  ;;  %874 = vmatpush.msrb.mxu1 %v853_v56  ;;  %s1105_s22 = sshll.u32 %s1786_s16, 4  ;;  %s1106_s22 = int_to_ptr.vmem [resolvable:$true] %s1105_s22 }
  0xfe   : > { %v722_v25 = vadd.f32 %v1608_v37, %v721_v61  ;;  %v817_v1 = vsel %vm771_vm2, %v762_v46, 0.0  ;;  %v1005_v46 = vld [vmem:[%s1858_s8] sm:$0xff] }
  0xff   : > { %v679_v59 = vpop.f32.mrf.mxu0  ;;  %875 = vmatpush.msrb.mxu1 %v852_v0 }
 0x100   : > { %v680_v63 = vadd.f32 %v1608_v37, %v679_v59  ;;  %v763_v59 = vmax.f32 %v716_v43, 0.0 }
 0x102   : > { %v751_v3 = vmax.f32 %v680_v63, 0.0  ;;  %v725_v63 = vadd.f32 %v1608_v37, %v1666_v27  ;;  %v889_v27 = vld [vmem:[%s1640_s20 + $0x38] sm:$0xff] }
 0x103   : > { %1261 = vmatmul.msk.f32.gmra.mxu3 %vm916_vm3, %v889_v27 }
 0x104   : > { %v795_v8 = vsel %vm771_vm2, %v751_v3, 0.0  ;;  %v765_v3 = vmax.f32 %v722_v25, 0.0  ;;  %v766_v11 = vmax.f32 %v725_v63, 0.0 }
 0x105   : > { %v796_v9 = vadd.f32 %v795_v8, %v794_v6  ;;  %v819_v6 = vsel %vm771_vm2, %v763_v59, 0.0 }
 0x106   : > { %v823_v14 = vsel %vm771_vm2, %v765_v3, 0.0  ;;  %v825_v17 = vsel %vm771_vm2, %v766_v11, 0.0 }
 0x107   : > { %v798_v39 = vadd.f32 %v797_v12, %v796_v9  ;;  %v736_v9 = vpop.f32.mrf.mxu3  ;;  %v821_v12 = vsel %vm771_vm2, %v764_v2, 0.0 }
 0x108   : > { %v737_v47 = vadd.f32 %v1608_v37, %v736_v9 }
 0x109   : > { %v800_v16 = vadd.f32 %v799_v13, %v798_v39  ;;  %v731_v13 = vadd.f32 %v1608_v37, %v1701_v18  ;;  %v769_v18 = vmax.f32 %v734_v60, 0.0 }
 0x10b   : > { %v802_v21 = vadd.f32 %v801_v19, %v800_v16  ;;  %v768_v19 = vmax.f32 %v731_v13, 0.0  ;;  %v831_v28 = vsel %vm771_vm2, %v769_v18, 0.0 }
 0x10d   : > { %v804_v26 = vadd.f32 %v803_v22, %v802_v21  ;;  %v827_v21 = vsel %vm771_vm2, %v767_v15, 0.0  ;;  %v770_v22 = vmax.f32 %v737_v47, 0.0  ;;  %v829_v24 = vsel %vm771_vm2, %v768_v19, 0.0 }
 0x10f   : > { %v806_v31 = vadd.f32 %v805_v53, %v804_v26  ;;  %v842_v26 = vmul.f32 256.0, %v1331_v50  ;;  %v833_v37 = vsel %vm771_vm2, %v770_v22, 0.0  ;;  %v961_v48 = vpop.f32.mrf.mxu3 }
 0x111   : > { %v808_v34 = vadd.f32 %v807_v55, %v806_v31  ;;  %v843_v30 = vsub.f32 1.0, %v842_v26 }
 0x113   : > { %v810_v38 = vadd.f32 %v809_v58, %v808_v34  ;;  %v844_v32 = vmul.f32 %v1331_v50, %v843_v30 }
 0x115   : > { %v812_v44 = vadd.f32 %v811_v41, %v810_v38  ;;  %v845_v58 = vadd.f32 %v1331_v50, %v844_v32  ;;  %v850_v41 = vadd.f32 1.0, %v849_v36 }
 0x117   : > { %v814_v51 = vadd.f32 %v813_v45, %v812_v44  ;;  %v847_v61 = vsel %vm846_vm4, %v1331_v50, %v845_v58  ;;  %v1008_v44 = vld [vmem:[%s1858_s8 + $0x18] sm:$0xff]  ;;  %v1006_v45 = vld [vmem:[%s1858_s8 + $0x8] sm:$0xff]  ;;  %v964_v25 = vpop.f32.mrf.mxu3 }
 0x118   : > { %1049 = vmatpush.msra.mxu1 %v1008_v44 }
 0x119   : > { %v816_v62 = vadd.f32 %v815_v57, %v814_v51  ;;  %v1328_v57 = vld [vmem:[%s1857_s7] ss:$0 sm:$0xff] }
 0x11a   : > { %1050 = vmatpush.msra.mxu1 %v1007_v5 }
 0x11b   : > { %v818_v4 = vadd.f32 %v817_v1, %v816_v62 }
 0x11c   : > { %1051 = vmatpush.msra.mxu1 %v1006_v45 }
 0x11d   : > { %v820_v8 = vadd.f32 %v819_v6, %v818_v4 }
 0x11e   : > { %1052 = vmatpush.msra.mxu1 %v1005_v46 }
 0x11f   : > { %v822_v39 = vadd.f32 %v821_v12, %v820_v8  ;;  %v967_v59 = vpop.f32.mrf.mxu3 }
 0x121   : > { %v824_v16 = vadd.f32 %v823_v14, %v822_v39 }
 0x123   : > { %v826_v20 = vadd.f32 %v825_v17, %v824_v16 }
 0x125   : > { %v828_v23 = vadd.f32 %v827_v21, %v826_v20 }
 0x127   : > { %v830_v53 = vadd.f32 %v829_v24, %v828_v23 }
 0x129   : > { %v832_v29 = vadd.f32 %v831_v28, %v830_v53 }
 0x12b   : > { %v834_v31 = vadd.f32 %v833_v37, %v832_v29 }
 0x12d   : > { %v835_v55 = vrot.slane %v834_v31, 4 }
 0x12f   : > { %v836_v33 = vadd.f32 %v835_v55, %v834_v31 }
 0x131   : > { %v837_v34 = vrot.slane %v836_v33, 2 }
 0x133   : > { %v838_v35 = vadd.f32 %v837_v34, %v836_v33 }
 0x135   : > { %v839_v38 = vrot.slane %v838_v35, 1 }
 0x137   : > { %v840_v40 = vadd.f32 %v839_v38, %v838_v35 }
 0x139   : > { %v848_v42 = vmul.f32 %v847_v61, %v840_v40 }
 0x13b   : > { %v851_v43 = vmul.f32 %v850_v41, %v848_v42 }
 0x13d   : > { %1251 = vmatmul.msk.f32.vlgmr.msrb.gmra.mxu1 %vm771_vm2, %v851_v43  ;;  %1252 = vmatmul.msk.f32.vlgmr.msrb.gmra.mxu2 %vm771_vm2, %v851_v43 }
 0x154   : > { %v970_v3 = vpop.f32.mrf.mxu3 }
 0x15c   : > { %v973_v8 = vpop.f32.mrf.mxu3 }
 0x176   : > { %v976_v13 = vpop.f32.mrf.mxu3 }
 0x17e   : > { %v979_v60 = vpop.f32.mrf.mxu3 }
 0x186   : > { %v982_v50 = vpop.f32.mrf.mxu3 }
 0x1ba   : > { %v877_v51 = vpop.f32.mrf.mxu1 }
 0x1bb   : > { %v878_v52 = vadd.f32 %v877_v51, %v856_v49 }
 0x1bd   : > { %881 = vst.msk [vmem:[%s1786_s16] sm:$0x1] %vm880_vm5, %v878_v52 }
 0x1c0   : > { %v912_v54 = vpop.f32.mrf.mxu2 }
 0x1c1   : > { %v915_v56 = vperm.slane %v912_v54, 0 }
 0x1c3   : > { %v962_v62 = vadd.f32 %v961_v48, %v915_v56  ;;  %v965_v1 = vadd.f32 %v964_v25, %v915_v56  ;;  %v968_v6 = vadd.f32 %v967_v59, %v915_v56  ;;  %v971_v10 = vadd.f32 %v970_v3, %v915_v56 }
 0x1c4   : > { %v974_v12 = vadd.f32 %v973_v8, %v915_v56  ;;  %v977_v15 = vadd.f32 %v976_v13, %v915_v56  ;;  %v980_v17 = vadd.f32 %v979_v60, %v915_v56  ;;  %v983_v20 = vadd.f32 %v982_v50, %v915_v56 }
 0x1c5   : > { %v989_v63 = vadd.f32 %v1328_v57, %v962_v62  ;;  %v990_v2 = vadd.f32 %v1328_v57, %v965_v1  ;;  %v991_v7 = vadd.f32 %v1328_v57, %v968_v6  ;;  %v992_v27 = vadd.f32 %v1328_v57, %v971_v10 }
 0x1c6   : > { %v993_v14 = vadd.f32 %v1328_v57, %v974_v12  ;;  %v994_v47 = vadd.f32 %v1328_v57, %v977_v15  ;;  %v995_v19 = vadd.f32 %v1328_v57, %v980_v17  ;;  %v996_v18 = vadd.f32 %v1328_v57, %v983_v20 }
 0x1c7   : > { %v997_v0 = vmax.f32 %v989_v63, 0.0  ;;  %v998_v4 = vmax.f32 %v990_v2, 0.0  ;;  %v999_v9 = vmax.f32 %v991_v7, 0.0  ;;  %v1000_v11 = vmax.f32 %v992_v27, 0.0 }
 0x1c8   : > { %v1001_v39 = vmax.f32 %v993_v14, 0.0  ;;  %v1002_v16 = vmax.f32 %v994_v47, 0.0  ;;  %v1003_v21 = vmax.f32 %v995_v19, 0.0  ;;  %v1004_v22 = vmax.f32 %v996_v18, 0.0 }
 0x1c9   : > { %1262 = vmatmul.msk.f32.vlgmr.msra.gmra.mxu1 %vm771_vm2, %v997_v0 }
 0x1d1   : > { %1263 = vmatmul.msk.f32.gmra.mxu1 %vm771_vm2, %v998_v4 }
 0x1d9   : > { %1264 = vmatmul.msk.f32.gmra.mxu1 %vm771_vm2, %v999_v9 }
 0x1e1   : > { %1265 = vmatmul.msk.f32.gmra.mxu1 %vm771_vm2, %v1000_v11 }
 0x1e9   : > { %1266 = vmatmul.msk.f32.gmra.mxu1 %vm771_vm2, %v1001_v39 }
 0x1f1   : > { %1267 = vmatmul.msk.f32.gmra.mxu1 %vm771_vm2, %v1002_v16 }
 0x1f9   : > { %1268 = vmatmul.msk.f32.gmra.mxu1 %vm771_vm2, %v1003_v21 }
 0x201   : > { %1269 = vmatmul.msk.f32.gmra.mxu1 %vm771_vm2, %v1004_v22 }
 0x202   : > { %1359 = shalt.err (!%p1356_p3)
}
 0x203   : > { %1287 = dma.vmem_to_hbm [thread:$0]  (%p1505_p5), %s1106_s22, 16, %s1108_s30, %s1092_s24   ;;  %v1329_v23 = vld [vmem:[%s1859_s9] ss:$0 sm:$0xff] }
 0x204   : > { %s1879_s0 = sshll.u32 %s1528_s15, 6 }
 0x205   : > { %s484_s4 = scalar_lea.vmem %s1862_s12, %s1879_s0 }
 0x246   : > { %v1054_v24 = vpop.f32.mrf.mxu1 }
 0x247   : > { %v1055_v26 = vadd.f32 %v1329_v23, %v1054_v24 }
 0x249   : > { %1078 = vst.msk [vmem:[%s484_s4] sm:$0xff] %vm771_vm2, %v1055_v26 }
 0x24e   : > { %v1057_v53 = vpop.f32.mrf.mxu1 }
 0x24f   : > { %v1058_v28 = vadd.f32 %v1329_v23, %v1057_v53 }
 0x251   : > { %1079 = vst.msk [vmem:[%s484_s4 + $0x8] sm:$0xff] %vm771_vm2, %v1058_v28 }
 0x256   : > { %v1060_v37 = vpop.f32.mrf.mxu1 }
 0x257   : > { %v1061_v29 = vadd.f32 %v1329_v23, %v1060_v37 }
 0x259   : > { %1080 = vst.msk [vmem:[%s484_s4 + $0x10] sm:$0xff] %vm771_vm2, %v1061_v29 }
 0x25e   : > { %v1063_v30 = vpop.f32.mrf.mxu1 }
 0x25f   : > { %v1064_v31 = vadd.f32 %v1329_v23, %v1063_v30 }
 0x261   : > { %1081 = vst.msk [vmem:[%s484_s4 + $0x18] sm:$0xff] %vm771_vm2, %v1064_v31 }
 0x266   : > { %v1066_v55 = vpop.f32.mrf.mxu1 }
 0x267   : > { %v1067_v32 = vadd.f32 %v1329_v23, %v1066_v55 }
 0x269   : > { %1082 = vst.msk [vmem:[%s484_s4 + $0x20] sm:$0xff] %vm771_vm2, %v1067_v32 }
 0x26e   : > { %v1069_v33 = vpop.f32.mrf.mxu1 }
 0x26f   : > { %v1070_v34 = vadd.f32 %v1329_v23, %v1069_v33 }
 0x271   : > { %1083 = vst.msk [vmem:[%s484_s4 + $0x28] sm:$0xff] %vm771_vm2, %v1070_v34 }
 0x276   : > { %v1072_v58 = vpop.f32.mrf.mxu1 }
 0x277   : > { %v1073_v35 = vadd.f32 %v1329_v23, %v1072_v58 }
 0x279   : > { %1084 = vst.msk [vmem:[%s484_s4 + $0x30] sm:$0xff] %vm771_vm2, %v1073_v35 }
 0x27e   : > { %v1075_v36 = vpop.f32.mrf.mxu1 }
 0x27f   : > { %v1076_v38 = vadd.f32 %v1329_v23, %v1075_v36 }
 0x281   : > { %1085 = vst.msk [vmem:[%s484_s4 + $0x38] sm:$0xff] %vm771_vm2, %v1076_v38 }
 0x282 PF: > { %p1293_p4 = scmp.ge.s32.totalorder %s1394_s28, 2  ;;  %s1127_s2 = sand.u32 1, %s1382_s25  }
 0x283   : > { %s1128_s5 = scalar_lea.sflag [#allocation3], %s1127_s2 }
 0x284   : > { %p1290_p5 = pnand %p1293_p4, %p1509_p6 }
 0x286   : > { %p1291_p7 = pneg %p1290_p5 }
 0x288   : > { %1377 = dma.done.wait (%p1291_p7), %s1128_s5, 16  }
 0x289   : > { %1379 = vsyncadd (%p1291_p7), %s1128_s5, 4294967280  ;;  %p24_p8 = scmp.ge.s32.totalorder %s1492_s14, 4   ;;  %s1880_s25 = smov %s1386_s26 }
 0x28a   : > { %s1881_s26 = smov %s1390_s27  ;;  %s1882_s27 = smov %s1503_s17 }
 0x28b   : > { %s1883_s28 = smov %s1492_s14  ;;  %26 = sbr.rel (!%p24_p8) target bundleno = 10 (0xa), region = 121 }
 0x290   :  { %1133 = vsyncpa [#allocation3], 1 }
 0x291   :  { %1135 = vsyncpa [#allocation3 + $0x1], 1 }

</bundles_post_ra>
